<compile_context>
chip_gen: v6e
topology: v6e:2x2x1
jax: 0.10.0
libtpu: 0.0.40
codegen_flags: <defaults>
</compile_context>

<pallas_src>
import functools

import jax
import jax.numpy as jnp
from jax.experimental import pallas as pl
from jax.experimental.pallas import tpu as pltpu


def _log_sigmoid(x):
    # numerically stable log(sigmoid(x)) = min(x, 0) - log(1 + exp(-|x|))
    return jnp.minimum(x, 0.0) - jnp.log(1.0 + jnp.exp(-jnp.abs(x)))


def _skipgram_loss_kernel(u_ref, v_ref, out_ref, *, num_ctx, num_neg,
                          batch, tile_b):
    i = pl.program_id(0)

    u = u_ref[...].astype(jnp.float32)                  # (TB, D)

    def slab(j):
        # static index along the leading (CK) axis -> one (TB, D) slab
        return v_ref[j].astype(jnp.float32)

    # mean-before-dot: mean_j <u, v_j> == <u, mean_j v_j>  (linearity)
    v_ctx = slab(0)
    for j in range(1, num_ctx):                         # VPU adds, unrolled
        v_ctx = v_ctx + slab(j)
    v_neg = slab(num_ctx)
    for j in range(num_ctx + 1, num_ctx + num_neg):
        v_neg = v_neg + slab(j)

    pos = jnp.sum(u * v_ctx, axis=-1, keepdims=True) * jnp.float32(1.0 / num_ctx)
    neg = jnp.sum(u * v_neg, axis=-1, keepdims=True) * jnp.float32(1.0 / num_neg)
    per_row = _log_sigmoid(pos) + _log_sigmoid(-neg)    # (TB, 1)

    # mask padded tail rows so they do not contribute to the sum
    row = i * tile_b + jax.lax.broadcasted_iota(jnp.int32, (tile_b, 1), 0)
    per_row = jnp.where(row < batch, per_row, 0.0)

    tile_sum = jnp.sum(per_row, axis=0, keepdims=True)  # (1, 1)
    out_ref[...] = jnp.broadcast_to(tile_sum, (1, 128)) # lane-dense store


def skipgram_loss(u, v_all, num_ctx, num_neg):
    """u: (B, D) bf16/f32 center embeddings; v_all: (CK, B, D) with the C
    context rows first and K negative rows last.  Returns the scalar loss."""
    B, D = u.shape
    CK = v_all.shape[0]
    if num_ctx <= 0 or num_neg <= 0:
        raise ValueError("SkipGram loss requires >=1 context and >=1 negative")
    assert CK == num_ctx + num_neg

    # Generation-aware VMEM budget (64 MiB/TC on v7x, 128 MiB on v5e/v6e).
    try:
        vmem_cap = pltpu.get_tpu_info().vmem_capacity_bytes
    except Exception:
        vmem_cap = 64 * 1024 * 1024                     # conservative (v7x)
    vmem_limit = min((vmem_cap * 5) // 8, 64 * 1024 * 1024)

    # Per-row VMEM footprint (lanes pad to 128 inside VMEM only), one buffer;
    # double-buffering uses 2x this, leaving half the limit for temporaries.
    d_lanes = max(128, ((D + 127) // 128) * 128)
    itemsize = jnp.dtype(u.dtype).itemsize
    per_row_vmem = (1 + CK) * d_lanes * itemsize
    budget = vmem_limit // 4
    tile_b = max(16, min(2048, (budget // per_row_vmem) // 16 * 16))
    tile_b = min(tile_b, ((B + 15) // 16) * 16)         # don't over-tile tiny B

    b_pad = ((B + tile_b - 1) // tile_b) * tile_b
    if b_pad != B:
        u = jnp.pad(u, ((0, b_pad - B), (0, 0)))
        v_all = jnp.pad(v_all, ((0, 0), (0, b_pad - B), (0, 0)))
    num_tiles = b_pad // tile_b

    kernel = functools.partial(
        _skipgram_loss_kernel, num_ctx=num_ctx, num_neg=num_neg,
        batch=B, tile_b=tile_b)

    partials = pl.pallas_call(
        kernel,
        out_shape=jax.ShapeDtypeStruct((num_tiles, 128), jnp.float32),
        grid=(num_tiles,),
        in_specs=[
            pl.BlockSpec((tile_b, D), lambda i: (i, 0)),
            pl.BlockSpec((CK, tile_b, D), lambda i: (0, i, 0)),
        ],
        out_specs=pl.BlockSpec((1, 128), lambda i: (i, 0)),
        compiler_params=pltpu.CompilerParams(
            dimension_semantics=("parallel",),
            vmem_limit_bytes=vmem_limit,
        ),
    )(u, v_all)

    # Tiny final reduction / negate / mean in JAX (f32).
    return -jnp.sum(partials[:, 0]) / B


class SkipGramModelJAX:
    """JAX/Pallas port of the PyTorch SkipGramModel forward pass."""

    def __init__(self, vocabulary_size, embedding_dim, win_size=1, key=None):
        if key is None:
            key = jax.random.PRNGKey(0)
        k_in, k_out = jax.random.split(key)
        initrange = 0.5 / embedding_dim
        self.in_embeddings = jax.random.uniform(
            k_in, (vocabulary_size, embedding_dim),
            minval=-initrange, maxval=initrange, dtype=jnp.float32)
        self.out_embeddings = jax.random.uniform(
            k_out, (vocabulary_size, embedding_dim),
            minval=-initrange, maxval=initrange, dtype=jnp.float32)
        self.win_size = win_size
        # bf16 shipping copies (halve gather + kernel HBM traffic); the f32
        # masters are what get_embeddings() returns.  No lane padding in HBM.
        self._in_bf16 = self.in_embeddings.astype(jnp.bfloat16)
        self._out_bf16 = self.out_embeddings.astype(jnp.bfloat16)

    def forward(self, centers, context, neg_context):
        batch_size = centers.shape[0]
        num_ctx = context.shape[1]                      # == 2 * win_size
        num_neg = neg_context.shape[1]
        # Embedding lookups (glue, plain XLA gather).  Context + negatives are
        # gathered once, laid out (CK, B, D) so the kernel's batch axis is the
        # dense sublane axis and the CK reduction is pure VPU adds.
        u = jnp.take(self._in_bf16, centers, axis=0)                 # (B, D)
        idx_all = jnp.concatenate([context.T, neg_context.T], axis=0)  # (CK, B)
        v_all = jnp.take(self._out_bf16, idx_all.reshape(-1), axis=0)
        v_all = v_all.reshape(idx_all.shape[0], batch_size, -1)      # (CK, B, D)
        return skipgram_loss(u, v_all, num_ctx, num_neg)

    def get_embeddings(self):
        return self.in_embeddings


if __name__ == "__main__":
    vocab_size = 50
    embedding_dim = 32
    win_size = 1
    num_neg = 5

    key = jax.random.PRNGKey(0)
    k_model, _ = jax.random.split(key)

    model = SkipGramModelJAX(vocab_size, embedding_dim, win_size=win_size,
                             key=k_model)

    def ref_forward(centers, context, neg_context):
        B = centers.shape[0]
        u = jnp.take(model.in_embeddings, centers, axis=0)
        vc = jnp.take(model.out_embeddings, context.reshape(-1),
                      axis=0).reshape(B, -1, embedding_dim)
        vn = jnp.take(model.out_embeddings, neg_context.reshape(-1),
                      axis=0).reshape(B, -1, embedding_dim)
        pos = jnp.mean(jnp.einsum('bd,bcd->bc', u, vc), axis=1)
        neg = jnp.mean(jnp.einsum('bd,bkd->bk', u, vn), axis=1)
        loss = jax.nn.log_sigmoid(pos) + jax.nn.log_sigmoid(-neg)
        return -jnp.mean(loss)

    ok = True
    # Case 1: batch multiple of 16.  Case 2: ragged batch (exercises masking).
    for batch in (16, 13):
        kc, kx, kn = jax.random.split(jax.random.fold_in(key, batch), 3)
        centers = jax.random.randint(kc, (batch,), 0, vocab_size, dtype=jnp.int32)
        context = jax.random.randint(kx, (batch, 2 * win_size), 0, vocab_size,
                                     dtype=jnp.int32)
        neg_context = jax.random.randint(kn, (batch, num_neg), 0, vocab_size,
                                         dtype=jnp.int32)

        loss = model.forward(centers, context, neg_context)
        jax.block_until_ready(loss)

        ref = ref_forward(centers, context, neg_context)
        # bf16 activation shipping -> tolerance ~1e-4 worst case at this scale
        if not jnp.allclose(loss, ref, atol=1e-3, rtol=1e-3):
            ok = False
            print("MISMATCH batch", batch, float(loss), float(ref))

    assert ok
    print("KERNEL_OK")
</pallas_src>

<mosaic_0001>
module attributes {stable_mosaic.version = 11 : i64} {
  func.func @_skipgram_loss_kernel(%arg0: i32, %arg1: memref<16x32xbf16, #tpu.memory_space<vmem>>, %arg2: memref<7x16x32xbf16, #tpu.memory_space<vmem>>, %arg3: memref<1x128xf32, #tpu.memory_space<vmem>>) attributes {dimension_semantics = [#tpu.dimension_semantics<parallel>], iteration_bounds = array<i64: 1>, scalar_prefetch = 0 : i64, scratch_operands = 0 : i64, tpu.core_type = #tpu.core_type<tc>, window_params = [{transform_indices = @transform_0, window_bounds = array<i64: 16, 32>}, {transform_indices = @transform_1, window_bounds = array<i64: 7, 16, 32>}, {transform_indices = @transform_2, window_bounds = array<i64: 1, 128>}]} {
    %c0 = arith.constant 0 : index
    %c0_0 = arith.constant 0 : index
    %0 = vector.load %arg1[%c0, %c0_0] : memref<16x32xbf16, #tpu.memory_space<vmem>>, vector<16x32xbf16>
    %1 = arith.extf %0 : vector<16x32xbf16> to vector<16x32xf32>
    %c0_1 = arith.constant 0 : index
    %c0_2 = arith.constant 0 : index
    %c0_3 = arith.constant 0 : index
    %2 = vector.load %arg2[%c0_1, %c0_2, %c0_3] : memref<7x16x32xbf16, #tpu.memory_space<vmem>>, vector<1x16x32xbf16>
    %3 = vector.shape_cast %2 : vector<1x16x32xbf16> to vector<16x32xbf16>
    %4 = arith.extf %3 : vector<16x32xbf16> to vector<16x32xf32>
    %c1 = arith.constant 1 : index
    %c0_4 = arith.constant 0 : index
    %c0_5 = arith.constant 0 : index
    %5 = vector.load %arg2[%c1, %c0_4, %c0_5] : memref<7x16x32xbf16, #tpu.memory_space<vmem>>, vector<1x16x32xbf16>
    %6 = vector.shape_cast %5 : vector<1x16x32xbf16> to vector<16x32xbf16>
    %7 = arith.extf %6 : vector<16x32xbf16> to vector<16x32xf32>
    %8 = arith.addf %4, %7 : vector<16x32xf32>
    %c2 = arith.constant 2 : index
    %c0_6 = arith.constant 0 : index
    %c0_7 = arith.constant 0 : index
    %9 = vector.load %arg2[%c2, %c0_6, %c0_7] : memref<7x16x32xbf16, #tpu.memory_space<vmem>>, vector<1x16x32xbf16>
    %10 = vector.shape_cast %9 : vector<1x16x32xbf16> to vector<16x32xbf16>
    %11 = arith.extf %10 : vector<16x32xbf16> to vector<16x32xf32>
    %c3 = arith.constant 3 : index
    %c0_8 = arith.constant 0 : index
    %c0_9 = arith.constant 0 : index
    %12 = vector.load %arg2[%c3, %c0_8, %c0_9] : memref<7x16x32xbf16, #tpu.memory_space<vmem>>, vector<1x16x32xbf16>
    %13 = vector.shape_cast %12 : vector<1x16x32xbf16> to vector<16x32xbf16>
    %14 = arith.extf %13 : vector<16x32xbf16> to vector<16x32xf32>
    %15 = arith.addf %11, %14 : vector<16x32xf32>
    %c4 = arith.constant 4 : index
    %c0_10 = arith.constant 0 : index
    %c0_11 = arith.constant 0 : index
    %16 = vector.load %arg2[%c4, %c0_10, %c0_11] : memref<7x16x32xbf16, #tpu.memory_space<vmem>>, vector<1x16x32xbf16>
    %17 = vector.shape_cast %16 : vector<1x16x32xbf16> to vector<16x32xbf16>
    %18 = arith.extf %17 : vector<16x32xbf16> to vector<16x32xf32>
    %19 = arith.addf %15, %18 : vector<16x32xf32>
    %c5 = arith.constant 5 : index
    %c0_12 = arith.constant 0 : index
    %c0_13 = arith.constant 0 : index
    %20 = vector.load %arg2[%c5, %c0_12, %c0_13] : memref<7x16x32xbf16, #tpu.memory_space<vmem>>, vector<1x16x32xbf16>
    %21 = vector.shape_cast %20 : vector<1x16x32xbf16> to vector<16x32xbf16>
    %22 = arith.extf %21 : vector<16x32xbf16> to vector<16x32xf32>
    %23 = arith.addf %19, %22 : vector<16x32xf32>
    %c6 = arith.constant 6 : index
    %c0_14 = arith.constant 0 : index
    %c0_15 = arith.constant 0 : index
    %24 = vector.load %arg2[%c6, %c0_14, %c0_15] : memref<7x16x32xbf16, #tpu.memory_space<vmem>>, vector<1x16x32xbf16>
    %25 = vector.shape_cast %24 : vector<1x16x32xbf16> to vector<16x32xbf16>
    %26 = arith.extf %25 : vector<16x32xbf16> to vector<16x32xf32>
    %27 = arith.addf %23, %26 : vector<16x32xf32>
    %28 = arith.mulf %1, %8 : vector<16x32xf32>
    %cst = arith.constant dense<0.000000e+00> : vector<16xf32>
    %29 = vector.multi_reduction <add>, %28, %cst [1] : vector<16x32xf32> to vector<16xf32>
    %30 = vector.shape_cast %29 : vector<16xf32> to vector<16x1xf32>
    %cst_16 = arith.constant 5.000000e-01 : f32
    %31 = vector.broadcast %cst_16 : f32 to vector<16x1xf32>
    %32 = arith.mulf %30, %31 : vector<16x1xf32>
    %33 = arith.mulf %1, %27 : vector<16x32xf32>
    %cst_17 = arith.constant dense<0.000000e+00> : vector<16xf32>
    %34 = vector.multi_reduction <add>, %33, %cst_17 [1] : vector<16x32xf32> to vector<16xf32>
    %35 = vector.shape_cast %34 : vector<16xf32> to vector<16x1xf32>
    %cst_18 = arith.constant 2.000000e-01 : f32
    %36 = vector.broadcast %cst_18 : f32 to vector<16x1xf32>
    %37 = arith.mulf %35, %36 : vector<16x1xf32>
    %cst_19 = arith.constant 0.000000e+00 : f32
    %38 = vector.broadcast %cst_19 : f32 to vector<16x1xf32>
    %39 = arith.minimumf %32, %38 : vector<16x1xf32>
    %40 = math.absf %32 : vector<16x1xf32>
    %cst_20 = arith.constant 0.000000e+00 : f32
    %41 = vector.broadcast %cst_20 : f32 to vector<16x1xf32>
    %42 = arith.subf %41, %40 : vector<16x1xf32>
    %43 = math.exp %42 : vector<16x1xf32>
    %cst_21 = arith.constant 1.000000e+00 : f32
    %44 = vector.broadcast %cst_21 : f32 to vector<16x1xf32>
    %45 = arith.addf %44, %43 : vector<16x1xf32>
    %46 = math.log %45 : vector<16x1xf32>
    %47 = arith.subf %39, %46 : vector<16x1xf32>
    %cst_22 = arith.constant 0.000000e+00 : f32
    %48 = vector.broadcast %cst_22 : f32 to vector<16x1xf32>
    %49 = arith.subf %48, %37 : vector<16x1xf32>
    %cst_23 = arith.constant 0.000000e+00 : f32
    %50 = vector.broadcast %cst_23 : f32 to vector<16x1xf32>
    %51 = arith.minimumf %49, %50 : vector<16x1xf32>
    %52 = math.absf %49 : vector<16x1xf32>
    %cst_24 = arith.constant 0.000000e+00 : f32
    %53 = vector.broadcast %cst_24 : f32 to vector<16x1xf32>
    %54 = arith.subf %53, %52 : vector<16x1xf32>
    %55 = math.exp %54 : vector<16x1xf32>
    %cst_25 = arith.constant 1.000000e+00 : f32
    %56 = vector.broadcast %cst_25 : f32 to vector<16x1xf32>
    %57 = arith.addf %56, %55 : vector<16x1xf32>
    %58 = math.log %57 : vector<16x1xf32>
    %59 = arith.subf %51, %58 : vector<16x1xf32>
    %60 = arith.addf %47, %59 : vector<16x1xf32>
    %c16_i32 = arith.constant 16 : i32
    %61 = arith.muli %arg0, %c16_i32 : i32
    %62 = tpu.iota {dimensions = array<i32: 0>} : vector<16x1xi32>
    %63 = vector.broadcast %61 : i32 to vector<16x1xi32>
    %64 = arith.addi %63, %62 : vector<16x1xi32>
    %c16_i32_26 = arith.constant 16 : i32
    %65 = vector.broadcast %c16_i32_26 : i32 to vector<16x1xi32>
    %66 = arith.cmpi slt, %64, %65 : vector<16x1xi32>
    %cst_27 = arith.constant 0.000000e+00 : f32
    %67 = vector.broadcast %cst_27 : f32 to vector<16x1xf32>
    %68 = arith.select %66, %60, %67 : vector<16x1xi1>, vector<16x1xf32>
    %cst_28 = arith.constant dense<0.000000e+00> : vector<1xf32>
    %69 = vector.multi_reduction <add>, %68, %cst_28 [0] : vector<16x1xf32> to vector<1xf32>
    %70 = vector.shape_cast %69 : vector<1xf32> to vector<1x1xf32>
    %71 = vector.shape_cast %70 : vector<1x1xf32> to vector<1x1xf32>
    %72 = vector.broadcast %71 : vector<1x1xf32> to vector<1x128xf32>
    %c0_29 = arith.constant 0 : index
    %c0_30 = arith.constant 0 : index
    %73 = vector.load %arg3[%c0_29, %c0_30] : memref<1x128xf32, #tpu.memory_space<vmem>>, vector<1x128xf32>
    tpu.vector_store %arg3[%c0_29, %c0_30], %72 {strides = array<i32>} : memref<1x128xf32, #tpu.memory_space<vmem>>, vector<1x128xf32>,
    return
  }
  func.func @transform_0(%arg0: i32) -> (i32, i32) {
    %c0_i32 = arith.constant 0 : i32
    %c0_i32_0 = arith.constant 0 : i32
    return %arg0, %c0_i32 : i32, i32
  }
  func.func @transform_1(%arg0: i32) -> (i32, i32, i32) {
    %c0_i32 = arith.constant 0 : i32
    %c0_i32_0 = arith.constant 0 : i32
    %c0_i32_1 = arith.constant 0 : i32
    return %c0_i32, %arg0, %c0_i32_0 : i32, i32, i32
  }
  func.func @transform_2(%arg0: i32) -> (i32, i32) {
    %c0_i32 = arith.constant 0 : i32
    %c0_i32_0 = arith.constant 0 : i32
    return %arg0, %c0_i32 : i32, i32
  }
}

</mosaic_0001>

<bundles_post_ra>
// kernel: tpu_custom_call.1
= control target key start
LH: loop header
LB: loop body
LE: loop exit
PB: predicated region body
PF: predicated region fallthrough
CT: control target
= control target key end

     0   :  { %7 = vsyncpa [#allocation3], 0  ;;  %s336_s0 = inlined_call_operand.hbm [shape: bf16[16,32], index: 0, kind: input, shape index: {}]   ;;  %s337_s1 = inlined_call_operand.hbm [shape: bf16[7,16,32], index: 1, kind: input, shape index: {}]   ;;  %s338_s2 = inlined_call_operand.hbm [shape: f32[1,128], index: 2, kind: output, shape index: {}]  }
   0x1   :  { %8 = vsyncpa [#allocation6], 0 }
   0x2   :  { %9 = vsyncpa [#allocation4], 0  ;;  %s303_s9 = smov [#allocation2]  }
   0x3   :  { %s15_s10 = sshll.u32 %s303_s9, 4  ;;  %s16_s10 = int_to_ptr.vmem [resolvable:$true] %s15_s10 }
   0x4   :  { %s245_s11 = scalar_lea.vmem %s16_s10, 128  ;;  %p250_p1 = scmp.lt.s32.totalorder %s16_s10, %s16_s10 }
   0x5   :  { %p246_p0 = scmp.ne.s32.totalorder %s16_s10, %s245_s11  ;;  %p251_p2 = scmp.lt.s32.totalorder %s245_s11, %s245_s11 }
   0x7   :  { %p252_p3 = por %p251_p2, %p250_p1 }
   0x9   :  { %p253_p4 = pnand %p252_p3, %p246_p0 }
   0xb   :  { %256 = shalt.err (!%p253_p4)
}
   0xc   :  { %s304_s12 = smov 64   ;;  %s305_s13 = smov 4  }
   0xd   :  { %21 = dma.hbm_to_vmem [thread:$0]  %s336_s0, 128, %s16_s10, [#allocation3], %s304_s12, %s304_s12, %s305_s13  }
   0xe   :  { %s306_s16 = smov [#allocation5]  }
   0xf   :  { %s27_s17 = sshll.u32 %s306_s16, 4  ;;  %s28_s17 = int_to_ptr.vmem [resolvable:$true] %s27_s17 }
  0x10   :  { %s265_s18 = scalar_lea.vmem %s28_s17, 896  ;;  %p270_p6 = scmp.lt.s32.totalorder %s28_s17, %s28_s17 }
  0x11   :  { %p266_p5 = scmp.ne.s32.totalorder %s28_s17, %s265_s18  ;;  %p271_p7 = scmp.lt.s32.totalorder %s265_s18, %s265_s18 }
  0x13   :  { %p272_p8 = por %p271_p7, %p270_p6 }
  0x15   :  { %p273_p9 = pnand %p272_p8, %p266_p5 }
  0x17   :  { %276 = shalt.err (!%p273_p9)
}
  0x18   :  { %33 = dma.hbm_to_vmem [thread:$0]  %s337_s1, 896, %s28_s17, [#allocation6], %s304_s12, %s304_s12, %s305_s13  }
  0x19   :  { %297 = dma.done.wait [#allocation3], 128  }
  0x1a   :  { %298 = vsyncadd [#allocation3], 4294967168 }
  0x1b   :  { %299 = dma.done.wait [#allocation6], 896  }
  0x1c   :  { %300 = vsyncadd [#allocation6], 4294966400  ;;  %v185_v0 = vld [vmem:[#allocation2] sm:$0xff]   ;;  %v189_v1 = vld [vmem:[#allocation5] sm:$0xff]   ;;  %vm90_vm0 = vcmask 261120   ;;  %s307_s0 = smov [#allocation7]  }
  0x1d   :  { %v193_v2 = vld [vmem:[#allocation5 + $0x8] sm:$0xff]   ;;  %v186_v3 = vunpack.c.l.bf16 %v185_v0  ;;  %v190_v4 = vunpack.c.l.bf16 %v189_v1  ;;  %v187_v6 = vunpack.c.h.bf16 %v185_v0  ;;  %v197_v7 = vld [vmem:[#allocation5 + $0x10] sm:$0xff]   ;;  %v201_v8 = vld [vmem:[#allocation5 + $0x18] sm:$0xff]   ;;  %v191_v10 = vunpack.c.h.bf16 %v189_v1  ;;  %s174_s1 = sshll.u32 %s307_s0, 4  ;;  %s175_s1 = int_to_ptr.vmem [resolvable:$true] %s174_s1 }
  0x1e   :  { %v194_v5 = vunpack.c.l.bf16 %v193_v2  ;;  %v205_v9 = vld [vmem:[#allocation5 + $0x20] sm:$0xff]   ;;  %v195_v11 = vunpack.c.h.bf16 %v193_v2  ;;  %v198_v12 = vunpack.c.l.bf16 %v197_v7  ;;  %v202_v13 = vunpack.c.l.bf16 %v201_v8  ;;  %v209_v14 = vld [vmem:[#allocation5 + $0x28] sm:$0xff]   ;;  %v213_v15 = vld [vmem:[#allocation5 + $0x30] sm:$0xff]   ;;  %s277_s21 = scalar_lea.vmem %s175_s1, 16  ;;  %s281_s22 = scalar_lea.vmem %s175_s1, 32 }
  0x1f   :  { %v206_v17 = vunpack.c.l.bf16 %v205_v9  ;;  %v210_v18 = vunpack.c.l.bf16 %v209_v14  ;;  %v199_v21 = vunpack.c.h.bf16 %v197_v7  ;;  %v203_v22 = vunpack.c.h.bf16 %v201_v8  ;;  %p278_p10 = scmp.ne.s32.totalorder %s175_s1, %s277_s21  ;;  %p282_p11 = scmp.lt.s32.totalorder %s175_s1, %s175_s1 }
  0x20   :  { %v53_v16 = vadd.f32 %v194_v5, %v190_v4  ;;  %v54_v19 = vadd.f32 %v195_v11, %v191_v10  ;;  %v65_v20 = vadd.f32 %v202_v13, %v198_v12  ;;  %v214_v24 = vunpack.c.l.bf16 %v213_v15  ;;  %p283_p12 = scmp.lt.s32.totalorder %s281_s22, %s277_s21 }
  0x21   :  { %v207_v25 = vunpack.c.h.bf16 %v205_v9  ;;  %v66_v28 = vadd.f32 %v203_v22, %v199_v21  ;;  %v211_v29 = vunpack.c.h.bf16 %v209_v14  ;;  %v215_v33 = vunpack.c.h.bf16 %v213_v15 }
  0x22   :  { %v88_v23 = vmul.f32 %v186_v3, %v53_v16  ;;  %v89_v26 = vmul.f32 %v187_v6, %v54_v19  ;;  %v72_v27 = vadd.f32 %v206_v17, %v65_v20  ;;  %p284_p13 = por %p283_p12, %p282_p11 }
  0x23   :  { %v73_v32 = vadd.f32 %v207_v25, %v66_v28 }
  0x24   :  { %v91_v30 = vsel %vm90_vm0, %v88_v23, 0.0  ;;  %v79_v31 = vadd.f32 %v210_v18, %v72_v27  ;;  %v94_v34 = vsel %vm90_vm0, %v89_v26, 0.0  ;;  %p285_p0 = pnand %p284_p13, %p278_p10 }
  0x25   :  { %92 = vadd.xlane.f32.xlu1 %v91_v30  ;;  %v80_v36 = vadd.f32 %v211_v29, %v73_v32 }
  0x26   :  { %v86_v35 = vadd.f32 %v214_v24, %v79_v31 }
  0x27   :  { %v87_v38 = vadd.f32 %v215_v33, %v80_v36 }
  0x28   :  { %v99_v37 = vmul.f32 %v186_v3, %v86_v35 }
  0x29   :  { %95 = vadd.xlane.f32.xlu1 %v94_v34  ;;  %v100_v40 = vmul.f32 %v187_v6, %v87_v38 }
  0x2a   :  { %v101_v39 = vsel %vm90_vm0, %v99_v37, 0.0 }
  0x2b   :  { %102 = vadd.xlane.f32.xlu0 %v101_v39  ;;  %v104_v41 = vsel %vm90_vm0, %v100_v40, 0.0 }
  0x2f   :  { %105 = vadd.xlane.f32.xlu0 %v104_v41 }
  0xae   :  { %v93_v42 = vpop.xlane.xlu1 %92 }
  0xaf   :  { %v97_v43 = vmul.f32 0.5, %v93_v42 }
  0xb1   :  { %v111_v44 = vand.u32 2147483647, %v97_v43  ;;  %v109_v16 = vmin.f32 %v97_v43, 0.0 }
  0xb2   :  { %v96_v45 = vpop.xlane.xlu1 %95 }
  0xb3   :  { %v113_v46 = vsub.f32 0.0, %v111_v44  ;;  %v98_v47 = vmul.f32 0.5, %v96_v45 }
  0xb4   :  { %v103_v49 = vpop.xlane.xlu0 %102 }
  0xb5   :  { %v112_v48 = vand.u32 2147483647, %v98_v47  ;;  %v115_v50 = vmul.f32 1.442695, %v113_v46  ;;  %v107_v51 = vmul.f32 0.2, %v103_v49 }
  0xb6   :  { %v110_v17 = vmin.f32 %v98_v47, 0.0 }
  0xb7   :  { %v114_v52 = vsub.f32 0.0, %v112_v48  ;;  %v127_v53 = vsub.f32 0.0, %v107_v51  ;;  %221 = vpow2.f32 %v115_v50 }
  0xb8   :  { %v106_v55 = vpop.xlane.xlu0 %105 }
  0xb9   :  { %v117_v54 = vmul.f32 1.442695, %v114_v52  ;;  %v131_v56 = vand.u32 2147483647, %v127_v53  ;;  %v108_v57 = vmul.f32 0.2, %v106_v55 }
  0xba   :  { %v129_v14 = vmin.f32 %v127_v53, 0.0 }
  0xbb   :  { %223 = vpow2.f32 %v117_v54  ;;  %v133_v58 = vsub.f32 0.0, %v131_v56  ;;  %v128_v59 = vsub.f32 0.0, %v108_v57 }
  0xbd   :  { %v135_v60 = vmul.f32 1.442695, %v133_v58  ;;  %v132_v61 = vand.u32 2147483647, %v128_v59  ;;  %v130_v19 = vmin.f32 %v128_v59, 0.0 }
  0xbf   :  { %225 = vpow2.f32 %v135_v60  ;;  %v134_v62 = vsub.f32 0.0, %v132_v61 }
  0xc1   :  { %v137_v63 = vmul.f32 1.442695, %v134_v62 }
  0xc3   :  { %227 = vpow2.f32 %v137_v63 }
  0xc4   :  { %v222_v0 = vpop.eup %221 }
  0xc5   :  { %v119_v2 = vadd.f32 1.0, %v222_v0 }
  0xc7   :  { %229 = vlog2.f32 %v119_v2 }
  0xc8   :  { %v224_v1 = vpop.eup %223 }
  0xc9   :  { %v120_v3 = vadd.f32 1.0, %v224_v1 }
  0xcb   :  { %231 = vlog2.f32 %v120_v3 }
  0xcc   :  { %v226_v4 = vpop.eup %225 }
  0xcd   :  { %v139_v5 = vadd.f32 1.0, %v226_v4 }
  0xcf   :  { %233 = vlog2.f32 %v139_v5 }
  0xd0   :  { %v228_v6 = vpop.eup %227 }
  0xd1   :  { %v140_v7 = vadd.f32 1.0, %v228_v6 }
  0xd3   :  { %235 = vlog2.f32 %v140_v7 }
  0xd4   :  { %v230_v8 = vpop.eup %229 }
  0xd5   :  { %v122_v12 = vmul.f32 0.6931472, %v230_v8 }
  0xd7   :  { %v125_v21 = vsub.f32 %v109_v16, %v122_v12 }
  0xd8   :  { %v232_v9 = vpop.eup %231 }
  0xd9   :  { %v124_v13 = vmul.f32 0.6931472, %v232_v9 }
  0xdb   :  { %v126_v22 = vsub.f32 %v110_v17, %v124_v13 }
  0xdc   :  { %v234_v10 = vpop.eup %233 }
  0xdd   :  { %v142_v11 = vmul.f32 0.6931472, %v234_v10 }
  0xdf   :  { %v145_v18 = vsub.f32 %v129_v14, %v142_v11 }
  0xe0   :  { %v236_v15 = vpop.eup %235 }
  0xe1   :  { %v144_v20 = vmul.f32 0.6931472, %v236_v15  ;;  %v147_v24 = vadd.f32 %v145_v18, %v125_v21 }
  0xe3   :  { %v146_v23 = vsub.f32 %v130_v19, %v144_v20 }
  0xe5   :  { %v148_v25 = vadd.f32 %v146_v23, %v126_v22 }
  0xe7   :  { %v160_v26 = vadd.f32 %v148_v25, %v147_v24 }
  0xe9   :  { %v161_v27 = vrot.slane %v160_v26, 4 }
  0xeb   :  { %v162_v28 = vadd.f32 %v161_v27, %v160_v26 }
  0xed   :  { %v163_v29 = vrot.slane %v162_v28, 2 }
  0xef   :  { %v164_v30 = vadd.f32 %v163_v29, %v162_v28 }
  0xf1   :  { %v165_v31 = vrot.slane %v164_v30, 1 }
  0xf3   :  { %v166_v32 = vadd.f32 %v165_v31, %v164_v30 }
  0xf5   :  { %167 = vst [vmem:[#allocation7] sm:$0x1] %v166_v32 }
  0xf6   :  { %288 = shalt.err (!%p285_p0)
}
  0xf7   :  { %177 = dma.vmem_to_hbm [thread:$0]  %s175_s1, 16, %s338_s2, [#allocation4]  }
  0xf8   :  { %301 = dma.done.wait [#allocation4], 16  }
  0xf9   :  { %302 = vsyncadd [#allocation4], 4294967280 }
  0xfa   :  { %181 = vsyncpa [#allocation3], 1 }
  0xfb   :  { %182 = vsyncpa [#allocation6], 1 }
  0xfc   :  { %183 = vsyncpa [#allocation4], 1 }

</bundles_post_ra>
